<compile_context>
chip_gen: v7x
topology: tpu7x:2x2x1
jax: 0.10.0
libtpu: 0.0.40
codegen_flags: <defaults>
</compile_context>

<pallas_src>
from functools import partial

import jax
import jax.numpy as jnp
from jax.experimental import pallas as pl
from jax.experimental.pallas import tpu as pltpu


def _dma_copy_kernel(x_hbm, o_hbm, sem):
    # Single HBM->HBM DMA; no VMEM staging, no grid.
    cp = pltpu.make_async_copy(x_hbm, o_hbm, sem)
    cp.start()
    cp.wait()


@partial(jax.jit, static_argnums=(0,))
def view_as_heads(x200, x198):
    """Semantics of M.forward: return x198 viewed as x200 + (12, 64)."""
    # x201 = operator.add(x200, (12, 64))  -- tuple concatenation (pure Python)
    x201 = tuple(int(d) for d in x200) + (12, 64)

    H = x198.shape[-1]
    assert H == 12 * 64, "view target requires last dim == 12*64"

    nbytes = x198.size * x198.dtype.itemsize

    out = pl.pallas_call(
        _dma_copy_kernel,
        out_shape=jax.ShapeDtypeStruct(x198.shape, x198.dtype),
        in_specs=[pl.BlockSpec(memory_space=pl.ANY)],
        out_specs=pl.BlockSpec(memory_space=pl.ANY),
        scratch_shapes=[pltpu.SemaphoreType.DMA(())],
        cost_estimate=pl.CostEstimate(
            flops=0, transcendentals=0, bytes_accessed=2 * nbytes
        ),
    )(x198)

    # The actual "view": pure metadata reshape to x201 = (*x200, 12, 64).
    return out.reshape(x201)


if __name__ == "__main__":
    key = jax.random.PRNGKey(0)

    # Small shapes consistent with the module: last dim must be 768 == 12*64.
    B, S, H = 1, 16, 768
    x200 = (B, S)
    x198 = jax.random.normal(key, (B, S, H), dtype=jnp.float32)

    out = view_as_heads(x200, x198)
    out = jax.block_until_ready(out)

    # Correctness check against the pure-JAX reference (torch .view semantics).
    ref = x198.reshape(tuple(x200) + (12, 64))
    assert out.shape == (B, S, 12, 64), out.shape
    assert out.dtype == x198.dtype
    assert bool(jnp.array_equal(out, ref))

    print("KERNEL_OK")
</pallas_src>

<mosaic_0001>
module attributes {stable_mosaic.version = 11 : i64} {
  func.func @_dma_copy_kernel(%arg0: memref<1x16x768xf32, #tpu.memory_space<any>>, %arg1: memref<1x16x768xf32, #tpu.memory_space<any>>, %arg2: memref<!tpu.dma_semaphore, #tpu.memory_space<semaphore_mem>>) attributes {dimension_semantics = [], scalar_prefetch = 0 : i64, scratch_operands = 1 : i64, tpu.core_type = #tpu.core_type<tc>} {
    tpu.enqueue_dma source(%arg0 : memref<1x16x768xf32, #tpu.memory_space<any>>) target(%arg1 : memref<1x16x768xf32, #tpu.memory_space<any>>) target_semaphore(%arg2 : memref<!tpu.dma_semaphore, #tpu.memory_space<semaphore_mem>>)
    tpu.wait_dma2 semaphore(%arg2 : memref<!tpu.dma_semaphore, #tpu.memory_space<semaphore_mem>>) src(%arg0 : memref<1x16x768xf32, #tpu.memory_space<any>>) dst(%arg1 : memref<1x16x768xf32, #tpu.memory_space<any>>)
    return
  }
}

</mosaic_0001>

<bundles_post_ra>
// kernel: view_as_heads.1
= control target key start
LH: loop header
LB: loop body
LE: loop exit
PB: predicated region body
PF: predicated region fallthrough
CT: control target
= control target key end

     0   :  { %s78_s0 = inlined_call_operand.hbm [shape: f32[1,16,768], index: 0, kind: input, shape index: {}]   ;;  %s79_s1 = inlined_call_operand.vmem [shape: f32[1,16,768], index: 1, kind: output, shape index: {}]  }
   0x1   :  { %s13_s8 = sshll.u32 %s79_s1, 4  ;;  %s29_s11 = scalar_lea.hbm %s78_s0, 1536  ;;  %s14_s8 = int_to_ptr.vmem [resolvable:$true] %s13_s8 }
   0x2   :  { %p30_p0 = scmp.ne.s32.totalorder %s78_s0, %s29_s11  ;;  %p33_p1 = scmp.lt.u32.totalorder %s29_s11, %s78_s0 }
   0x4   :  { %p35_p2 = pnand %p33_p1, %p30_p0 }
   0x6   :  { %38 = shalt.err (!%p35_p2)  }
   0x7   :  { %s39_s16 = scalar_lea.vmem %s14_s8, 1536  ;;  %p44_p4 = scmp.lt.s32.totalorder %s14_s8, %s14_s8 }
   0x8   :  { %p40_p3 = scmp.ne.s32.totalorder %s14_s8, %s39_s16  ;;  %p45_p5 = scmp.lt.s32.totalorder %s39_s16, %s39_s16 }
   0xa   :  { %p46_p6 = por %p45_p5, %p44_p4 }
   0xc   :  { %p47_p7 = pnand %p46_p6, %p40_p3 }
   0xe   :  { %50 = shalt.err (!%p47_p7)  }
   0xf   :  { %16 = dma.hbm_to_vmem [thread:$0]  %s78_s0, 1536, %s14_s8, [#allocation2] }
  0x10   :  { %51 = dma.done.wait [#allocation2], 1536 }
  0x11   :  { %52 = vsyncadd [#allocation2], 4294965760 }
  0x12   :  { %22 = vsyncmov [#allocation2] }
  0x15   :  { %s23_s18 = vpop.sfrf %22 }
  0x16   :  { %p28_p8 = scmp.ne.s32.totalorder %s23_s18, 0 }
  0x18   :  { %27 = shalt.err (%p28_p8)  }

</bundles_post_ra>
